<compile_context>
chip_gen: v5e
topology: v5e:2x2
jax: 0.10.0
libtpu: 0.0.40
codegen_flags: <defaults>
</compile_context>

<pallas_src>
import functools

import jax
import jax.numpy as jnp
from jax.experimental import pallas as pl
from jax.experimental.pallas import tpu as pltpu

SMOOTH = 1.0


def _dice_kernel(pred_ref, tgt_ref, out_ref, acc_ref, *,
                 num_classes, bn, s_blk, s_fold, lane, s_total, ragged_s):
    """One grid step.

    pred_ref: (Bn, C, S_blk, L) logits.
    tgt_ref:  (Bn, 1, S_blk, L) class ids (float mask when num_classes == 1).
    out_ref:  (1, 3, C_acc) f32 partial sums [intersection, pred_sum, tgt_sum].
    acc_ref:  (3, C_acc, S_fold, L) f32 VMEM accumulator.
    """
    t = pl.program_id(1)
    last_t = pl.num_programs(1) - 1

    @pl.when(t == 0)
    def _init():
        acc_ref[...] = jnp.zeros_like(acc_ref)

    def fold_rows(x):
        # (Bn, 1, S_blk, L) -> (S_fold, L): register-level partial sums before
        # the accumulator read-modify-write (same add count, far fewer vld/vst).
        out = None
        for b in range(bn):
            for s0 in range(0, s_blk, s_fold):
                piece = x[b, 0, s0:s0 + s_fold, :]
                out = piece if out is None else out + piece
        return out

    def accumulate(mask_tail):
        logits = pred_ref[...].astype(jnp.float32)          # (Bn, C, S_blk, L)

        if mask_tail:
            row = jax.lax.broadcasted_iota(jnp.int32, (1, 1, s_blk, lane), 2)
            valid = row < (s_total - t * s_blk)             # (1,1,S_blk,L) bool
            masked = lambda x: jnp.where(valid, x, 0.0)
        else:
            masked = lambda x: x

        if num_classes == 1:
            act1 = 0.5 * jnp.tanh(0.5 * logits) + 0.5       # sigmoid via EUP tanh
            tgt1 = tgt_ref[...].astype(jnp.float32)
            act1, tgt1 = masked(act1), masked(tgt1)
            acc_ref[0, 0] += fold_rows(act1 * tgt1)
            acc_ref[1, 0] += fold_rows(act1)
            acc_ref[2, 0] += fold_rows(tgt1)
        elif num_classes == 2:
            # softmax over 2 classes == sigmoid(l1 - l0); accumulate class-1
            # sums only, class-0 sums are derived from totals in the wrapper.
            act1 = 0.5 * jnp.tanh(0.5 * (logits[:, 1:2] - logits[:, 0:1])) + 0.5
            tgt1 = (tgt_ref[...].astype(jnp.int32) == 1).astype(jnp.float32)
            act1, tgt1 = masked(act1), masked(tgt1)
            acc_ref[0, 0] += fold_rows(act1 * tgt1)
            acc_ref[1, 0] += fold_rows(act1)
            acc_ref[2, 0] += fold_rows(tgt1)
        else:
            # General softmax over the (small, static) class axis.
            m = logits[:, 0:1]
            for c in range(1, num_classes):
                m = jnp.maximum(m, logits[:, c:c + 1])
            e = jnp.exp(logits - m)
            den = e[:, 0:1]
            for c in range(1, num_classes):
                den = den + e[:, c:c + 1]
            act = e * pl.reciprocal(den, approx=False)
            tgt = tgt_ref[...].astype(jnp.int32)
            for c in range(num_classes):
                act_c = masked(act[:, c:c + 1])
                hot_c = masked((tgt == c).astype(jnp.float32))
                acc_ref[0, c] += fold_rows(act_c * hot_c)
                acc_ref[1, c] += fold_rows(act_c)
                acc_ref[2, c] += fold_rows(hot_c)

    if ragged_s:
        @pl.when(t != last_t)
        def _full_tiles():
            accumulate(False)

        @pl.when(t == last_t)
        def _ragged_tail():
            accumulate(True)
    else:
        accumulate(False)

    @pl.when(t == last_t)
    def _finalize():
        sums = jnp.sum(acc_ref[...], axis=(2, 3))           # (3, C_acc)
        out_ref[...] = sums[None]


def dice_loss_2d(pred, target, num_classes=2, *, step_bytes=None):
    """Pallas TPU implementation of DiceLoss2D.forward.

    pred:   (N, C, H, W) logits (any float dtype), C == max(num_classes, 1).
    target: (N, 1, H, W) integer class ids (float mask when num_classes == 1).
    """
    N, C, H, W = pred.shape
    assert C == max(num_classes, 1), "pred channels must equal num_classes"
    assert target.shape == (N, 1, H, W)
    HW = H * W

    # ---- Lane/sublane packing: (N, C, HW) -> (N, C, S, L), pure views. ----
    lane = None
    for cand in (512, 256, 128):
        if HW % cand == 0:
            lane = cand
            break
    if lane is None:
        # HW not a multiple of 128: single full-width spatial row per image.
        # TODO(synk): tile HW % 128 != 0 inputs without padding for huge images.
        lane = HW
    s_total = HW // lane

    pred4 = pred.reshape(N, C, s_total, lane)
    tgt4 = target.reshape(N, 1, s_total, lane)   # native (narrow) dtype kept

    # ---- Chip-aware tile sizing / VMEM budget. ----
    try:
        vmem_cap = int(pltpu.get_tpu_info().vmem_capacity_bytes)
    except Exception:
        vmem_cap = 64 * 1024 * 1024              # conservative (v7x-sized) default
    if step_bytes is None:
        step_bytes = max(4 << 20, int(vmem_cap * 0.40))
    vmem_limit = max(32 << 20, int(vmem_cap * 0.70))

    p_bytes = jnp.dtype(pred.dtype).itemsize
    t_bytes = jnp.dtype(target.dtype).itemsize
    row_bytes = (2 * C * lane * p_bytes          # pred block, double-buffered
                 + 2 * lane * t_bytes            # target block, double-buffered
                 + 6 * C * lane * 4              # f32 element-wise temporaries
                 + 4 * lane * 4)
    max_rows = max(8, int(step_bytes // row_bytes))

    if s_total <= max_rows:
        s_blk = s_total                          # one spatial tile per image
        bn_cap = max(1, max_rows // max(s_total, 1))
        bn = 1
        for d in range(1, N + 1):                # largest divisor of N <= cap
            if N % d == 0 and d <= bn_cap:
                bn = d
    else:
        bn = 1
        s_blk = max(8, (max_rows // 8) * 8)      # sublane-aligned spatial tile

    num_t = pl.cdiv(s_total, s_blk)
    ragged_s = (s_total % s_blk) != 0
    s_fold = 8 if s_blk % 8 == 0 else s_blk
    n_blocks = N // bn
    c_acc = 1 if num_classes <= 2 else num_classes

    kernel = functools.partial(
        _dice_kernel, num_classes=num_classes, bn=bn, s_blk=s_blk,
        s_fold=s_fold, lane=lane, s_total=s_total, ragged_s=ragged_s)

    partials = pl.pallas_call(
        kernel,
        out_shape=jax.ShapeDtypeStruct((n_blocks, 3, c_acc), jnp.float32),
        grid_spec=pltpu.PrefetchScalarGridSpec(
            num_scalar_prefetch=0,
            grid=(n_blocks, num_t),
            in_specs=[
                pl.BlockSpec((bn, C, s_blk, lane), lambda b, t: (b, 0, t, 0)),
                pl.BlockSpec((bn, 1, s_blk, lane), lambda b, t: (b, 0, t, 0)),
            ],
            out_specs=pl.BlockSpec((1, 3, c_acc), lambda b, t: (b, 0, 0)),
            scratch_shapes=[pltpu.VMEM((3, c_acc, s_fold, lane), jnp.float32)],
        ),
        compiler_params=pltpu.CompilerParams(
            dimension_semantics=("parallel", "arbitrary"),
            vmem_limit_bytes=vmem_limit),
    )(pred4, tgt4)

    # ---- Tiny epilogue over per-batch-block partial sums (plain JAX). ----
    sums = jnp.sum(partials, axis=0)             # (3, C_acc)
    inter, psum, tsum = sums[0], sums[1], sums[2]
    if num_classes == 1:
        return 1.0 - (2.0 * inter[0] + SMOOTH) / (psum[0] + tsum[0] + SMOOTH)
    if num_classes == 2:
        total = jnp.float32(N * HW)
        i1, p1, t1 = inter[0], psum[0], tsum[0]
        d1 = 1.0 - (2.0 * i1 + SMOOTH) / (p1 + t1 + SMOOTH)
        i0 = total - p1 - t1 + i1
        d0 = 1.0 - (2.0 * i0 + SMOOTH) / ((total - p1) + (total - t1) + SMOOTH)
        return (d0 + d1) / 2.0
    dice = 1.0 - (2.0 * inter + SMOOTH) / (psum + tsum + SMOOTH)
    return jnp.mean(dice)


def _reference_dice_loss(pred, target, num_classes):
    """Pure-JAX re-implementation of the PyTorch forward, for validation."""
    tgt = target[:, 0]
    if num_classes == 1:
        p = jax.nn.sigmoid(pred).reshape(-1)
        tt = tgt.reshape(-1).astype(jnp.float32)
        inter = jnp.sum(p * tt)
        union = jnp.sum(p) + jnp.sum(tt)
        return 1.0 - (2.0 * inter + SMOOTH) / (union + SMOOTH)
    p = jax.nn.softmax(pred, axis=1)
    loss = 0.0
    for c in range(num_classes):
        pc = p[:, c]
        tc = (tgt == c).astype(jnp.float32)
        inter = jnp.sum(pc * tc)
        union = jnp.sum(pc) + jnp.sum(tc)
        loss += 1.0 - (2.0 * inter + SMOOTH) / (union + SMOOTH)
    return loss / num_classes


if __name__ == "__main__":
    key = jax.random.PRNGKey(0)
    keys = jax.random.split(key, 8)

    # Case 1: module default (num_classes=2), lane-packed layout, batch-blocked.
    N, C, H, W = 4, 2, 16, 16
    pred = jax.random.normal(keys[0], (N, C, H, W), dtype=jnp.float32)
    target = jax.random.randint(keys[1], (N, 1, H, W), 0, C, dtype=jnp.int32)
    loss = jax.block_until_ready(dice_loss_2d(pred, target, num_classes=C))
    ref = _reference_dice_loss(pred, target, C)
    assert abs(float(loss) - float(ref)) < 1e-5, (float(loss), float(ref))

    # Case 2: general softmax (C=3), HW not a multiple of 128 (fallback layout).
    N2, C2, H2, W2 = 2, 3, 18, 18
    pred2 = jax.random.normal(keys[2], (N2, C2, H2, W2), dtype=jnp.float32)
    target2 = jax.random.randint(keys[3], (N2, 1, H2, W2), 0, C2, dtype=jnp.int32)
    loss2 = jax.block_until_ready(dice_loss_2d(pred2, target2, num_classes=C2))
    ref2 = _reference_dice_loss(pred2, target2, C2)
    assert abs(float(loss2) - float(ref2)) < 1e-5, (float(loss2), float(ref2))

    # Case 3: forced tiny step budget -> spatial tiling with a ragged tail.
    N3, C3, H3, W3 = 2, 2, 96, 64            # HW = 6144 -> L = 512, S = 12
    pred3 = jax.random.normal(keys[4], (N3, C3, H3, W3), dtype=jnp.float32)
    target3 = jax.random.randint(keys[5], (N3, 1, H3, W3), 0, C3, dtype=jnp.int32)
    loss3 = jax.block_until_ready(
        dice_loss_2d(pred3, target3, num_classes=C3, step_bytes=300_000))
    ref3 = _reference_dice_loss(pred3, target3, C3)
    assert abs(float(loss3) - float(ref3)) < 1e-5, (float(loss3), float(ref3))

    # Case 4: num_classes == 1 (sigmoid + float mask target).
    N4, C4, H4, W4 = 2, 1, 16, 16
    pred_s = jax.random.normal(keys[6], (N4, C4, H4, W4), dtype=jnp.float32)
    target_s = (jax.random.uniform(keys[7], (N4, 1, H4, W4)) > 0.5).astype(jnp.float32)
    loss4 = jax.block_until_ready(dice_loss_2d(pred_s, target_s, num_classes=1))
    ref4 = _reference_dice_loss(pred_s, target_s, 1)
    assert abs(float(loss4) - float(ref4)) < 1e-5, (float(loss4), float(ref4))

    print("KERNEL_OK")
</pallas_src>

<mosaic_0001>
module attributes {stable_mosaic.version = 11 : i64} {
  func.func @_dice_kernel(%arg0: i32, %arg1: i32, %arg2: memref<4x2x1x256xf32, #tpu.memory_space<vmem>>, %arg3: memref<4x1x1x256xi32, #tpu.memory_space<vmem>>, %arg4: memref<1x3x1xf32, #tpu.memory_space<vmem>>, %arg5: memref<3x1x1x256xf32, #tpu.memory_space<vmem>>) attributes {dimension_semantics = [#tpu.dimension_semantics<parallel>, #tpu.dimension_semantics<arbitrary>], iteration_bounds = array<i64: 1, 1>, scalar_prefetch = 0 : i64, scratch_operands = 1 : i64, tpu.core_type = #tpu.core_type<tc>, window_params = [{transform_indices = @transform_0, window_bounds = array<i64: 4, 2, 1, 256>}, {transform_indices = @transform_1, window_bounds = array<i64: 4, 1, 1, 256>}, {transform_indices = @transform_2, window_bounds = array<i64: 1, 3, 1>}]} {
    %c0_i32 = arith.constant 0 : i32
    %0 = arith.cmpi eq, %arg1, %c0_i32 : i32
    %1 = arith.extui %0 : i1 to i32
    %c0_i32_0 = arith.constant 0 : i32
    %2 = arith.cmpi ne, %1, %c0_i32_0 : i32
    scf.if %2 {
      %cst_34 = arith.constant 0.000000e+00 : f32
      %74 = vector.broadcast %cst_34 : f32 to vector<3x1x1x256xf32>
      %c0_35 = arith.constant 0 : index
      %c0_36 = arith.constant 0 : index
      %c0_37 = arith.constant 0 : index
      %c0_38 = arith.constant 0 : index
      %75 = vector.load %arg5[%c0_35, %c0_36, %c0_37, %c0_38] : memref<3x1x1x256xf32, #tpu.memory_space<vmem>>, vector<3x1x1x256xf32>
      tpu.vector_store %arg5[%c0_35, %c0_36, %c0_37, %c0_38], %74 {strides = array<i32>} : memref<3x1x1x256xf32, #tpu.memory_space<vmem>>, vector<3x1x1x256xf32>,
    } else {
    }
    %c0 = arith.constant 0 : index
    %c0_1 = arith.constant 0 : index
    %c0_2 = arith.constant 0 : index
    %c0_3 = arith.constant 0 : index
    %3 = vector.load %arg2[%c0, %c0_1, %c0_2, %c0_3] : memref<4x2x1x256xf32, #tpu.memory_space<vmem>>, vector<4x2x1x256xf32>
    %4 = vector.extract_strided_slice %3 {offsets = [0, 1, 0, 0], sizes = [4, 1, 1, 256], strides = [1, 1, 1, 1]} : vector<4x2x1x256xf32> to vector<4x1x1x256xf32>
    %5 = vector.extract_strided_slice %3 {offsets = [0, 0, 0, 0], sizes = [4, 1, 1, 256], strides = [1, 1, 1, 1]} : vector<4x2x1x256xf32> to vector<4x1x1x256xf32>
    %6 = arith.subf %4, %5 : vector<4x1x1x256xf32>
    %cst = arith.constant 5.000000e-01 : f32
    %7 = vector.broadcast %cst : f32 to vector<4x1x1x256xf32>
    %8 = arith.mulf %7, %6 : vector<4x1x1x256xf32>
    %9 = math.tanh %8 : vector<4x1x1x256xf32>
    %cst_4 = arith.constant 5.000000e-01 : f32
    %10 = vector.broadcast %cst_4 : f32 to vector<4x1x1x256xf32>
    %11 = arith.mulf %10, %9 : vector<4x1x1x256xf32>
    %cst_5 = arith.constant 5.000000e-01 : f32
    %12 = vector.broadcast %cst_5 : f32 to vector<4x1x1x256xf32>
    %13 = arith.addf %11, %12 : vector<4x1x1x256xf32>
    %c0_6 = arith.constant 0 : index
    %c0_7 = arith.constant 0 : index
    %c0_8 = arith.constant 0 : index
    %c0_9 = arith.constant 0 : index
    %14 = vector.load %arg3[%c0_6, %c0_7, %c0_8, %c0_9] : memref<4x1x1x256xi32, #tpu.memory_space<vmem>>, vector<4x1x1x256xi32>
    %c1_i32 = arith.constant 1 : i32
    %15 = vector.broadcast %c1_i32 : i32 to vector<4x1x1x256xi32>
    %16 = arith.cmpi eq, %14, %15 : vector<4x1x1x256xi32>
    %17 = arith.extui %16 : vector<4x1x1x256xi1> to vector<4x1x1x256xi32>
    %18 = arith.sitofp %17 : vector<4x1x1x256xi32> to vector<4x1x1x256xf32>
    %c0_10 = arith.constant 0 : index
    %c0_11 = arith.constant 0 : index
    %c0_12 = arith.constant 0 : index
    %c0_13 = arith.constant 0 : index
    %19 = vector.load %arg5[%c0_10, %c0_11, %c0_12, %c0_13] : memref<3x1x1x256xf32, #tpu.memory_space<vmem>>, vector<1x1x1x256xf32>
    %20 = vector.shape_cast %19 : vector<1x1x1x256xf32> to vector<1x256xf32>
    %21 = arith.mulf %13, %18 : vector<4x1x1x256xf32>
    %22 = vector.extract_strided_slice %21 {offsets = [0, 0, 0, 0], sizes = [1, 1, 1, 256], strides = [1, 1, 1, 1]} : vector<4x1x1x256xf32> to vector<1x1x1x256xf32>
    %23 = vector.shape_cast %22 : vector<1x1x1x256xf32> to vector<1x256xf32>
    %24 = vector.extract_strided_slice %21 {offsets = [1, 0, 0, 0], sizes = [1, 1, 1, 256], strides = [1, 1, 1, 1]} : vector<4x1x1x256xf32> to vector<1x1x1x256xf32>
    %25 = vector.shape_cast %24 : vector<1x1x1x256xf32> to vector<1x256xf32>
    %26 = arith.addf %23, %25 : vector<1x256xf32>
    %27 = vector.extract_strided_slice %21 {offsets = [2, 0, 0, 0], sizes = [1, 1, 1, 256], strides = [1, 1, 1, 1]} : vector<4x1x1x256xf32> to vector<1x1x1x256xf32>
    %28 = vector.shape_cast %27 : vector<1x1x1x256xf32> to vector<1x256xf32>
    %29 = arith.addf %26, %28 : vector<1x256xf32>
    %30 = vector.extract_strided_slice %21 {offsets = [3, 0, 0, 0], sizes = [1, 1, 1, 256], strides = [1, 1, 1, 1]} : vector<4x1x1x256xf32> to vector<1x1x1x256xf32>
    %31 = vector.shape_cast %30 : vector<1x1x1x256xf32> to vector<1x256xf32>
    %32 = arith.addf %29, %31 : vector<1x256xf32>
    %33 = arith.addf %20, %32 : vector<1x256xf32>
    %c0_14 = arith.constant 0 : index
    %c0_15 = arith.constant 0 : index
    %c0_16 = arith.constant 0 : index
    %c0_17 = arith.constant 0 : index
    %34 = vector.load %arg5[%c0_14, %c0_15, %c0_16, %c0_17] : memref<3x1x1x256xf32, #tpu.memory_space<vmem>>, vector<1x1x1x256xf32>
    %35 = vector.shape_cast %34 : vector<1x1x1x256xf32> to vector<1x256xf32>
    %36 = vector.shape_cast %33 : vector<1x256xf32> to vector<1x1x1x256xf32>
    tpu.vector_store %arg5[%c0_14, %c0_15, %c0_16, %c0_17], %36 {strides = array<i32>} : memref<3x1x1x256xf32, #tpu.memory_space<vmem>>, vector<1x1x1x256xf32>,
    %c1 = arith.constant 1 : index
    %c0_18 = arith.constant 0 : index
    %c0_19 = arith.constant 0 : index
    %c0_20 = arith.constant 0 : index
    %37 = vector.load %arg5[%c1, %c0_18, %c0_19, %c0_20] : memref<3x1x1x256xf32, #tpu.memory_space<vmem>>, vector<1x1x1x256xf32>
    %38 = vector.shape_cast %37 : vector<1x1x1x256xf32> to vector<1x256xf32>
    %39 = vector.extract_strided_slice %13 {offsets = [0, 0, 0, 0], sizes = [1, 1, 1, 256], strides = [1, 1, 1, 1]} : vector<4x1x1x256xf32> to vector<1x1x1x256xf32>
    %40 = vector.shape_cast %39 : vector<1x1x1x256xf32> to vector<1x256xf32>
    %41 = vector.extract_strided_slice %13 {offsets = [1, 0, 0, 0], sizes = [1, 1, 1, 256], strides = [1, 1, 1, 1]} : vector<4x1x1x256xf32> to vector<1x1x1x256xf32>
    %42 = vector.shape_cast %41 : vector<1x1x1x256xf32> to vector<1x256xf32>
    %43 = arith.addf %40, %42 : vector<1x256xf32>
    %44 = vector.extract_strided_slice %13 {offsets = [2, 0, 0, 0], sizes = [1, 1, 1, 256], strides = [1, 1, 1, 1]} : vector<4x1x1x256xf32> to vector<1x1x1x256xf32>
    %45 = vector.shape_cast %44 : vector<1x1x1x256xf32> to vector<1x256xf32>
    %46 = arith.addf %43, %45 : vector<1x256xf32>
    %47 = vector.extract_strided_slice %13 {offsets = [3, 0, 0, 0], sizes = [1, 1, 1, 256], strides = [1, 1, 1, 1]} : vector<4x1x1x256xf32> to vector<1x1x1x256xf32>
    %48 = vector.shape_cast %47 : vector<1x1x1x256xf32> to vector<1x256xf32>
    %49 = arith.addf %46, %48 : vector<1x256xf32>
    %50 = arith.addf %38, %49 : vector<1x256xf32>
    %c1_21 = arith.constant 1 : index
    %c0_22 = arith.constant 0 : index
    %c0_23 = arith.constant 0 : index
    %c0_24 = arith.constant 0 : index
    %51 = vector.load %arg5[%c1_21, %c0_22, %c0_23, %c0_24] : memref<3x1x1x256xf32, #tpu.memory_space<vmem>>, vector<1x1x1x256xf32>
    %52 = vector.shape_cast %51 : vector<1x1x1x256xf32> to vector<1x256xf32>
    %53 = vector.shape_cast %50 : vector<1x256xf32> to vector<1x1x1x256xf32>
    tpu.vector_store %arg5[%c1_21, %c0_22, %c0_23, %c0_24], %53 {strides = array<i32>} : memref<3x1x1x256xf32, #tpu.memory_space<vmem>>, vector<1x1x1x256xf32>,
    %c2 = arith.constant 2 : index
    %c0_25 = arith.constant 0 : index
    %c0_26 = arith.constant 0 : index
    %c0_27 = arith.constant 0 : index
    %54 = vector.load %arg5[%c2, %c0_25, %c0_26, %c0_27] : memref<3x1x1x256xf32, #tpu.memory_space<vmem>>, vector<1x1x1x256xf32>
    %55 = vector.shape_cast %54 : vector<1x1x1x256xf32> to vector<1x256xf32>
    %56 = vector.extract_strided_slice %18 {offsets = [0, 0, 0, 0], sizes = [1, 1, 1, 256], strides = [1, 1, 1, 1]} : vector<4x1x1x256xf32> to vector<1x1x1x256xf32>
    %57 = vector.shape_cast %56 : vector<1x1x1x256xf32> to vector<1x256xf32>
    %58 = vector.extract_strided_slice %18 {offsets = [1, 0, 0, 0], sizes = [1, 1, 1, 256], strides = [1, 1, 1, 1]} : vector<4x1x1x256xf32> to vector<1x1x1x256xf32>
    %59 = vector.shape_cast %58 : vector<1x1x1x256xf32> to vector<1x256xf32>
    %60 = arith.addf %57, %59 : vector<1x256xf32>
    %61 = vector.extract_strided_slice %18 {offsets = [2, 0, 0, 0], sizes = [1, 1, 1, 256], strides = [1, 1, 1, 1]} : vector<4x1x1x256xf32> to vector<1x1x1x256xf32>
    %62 = vector.shape_cast %61 : vector<1x1x1x256xf32> to vector<1x256xf32>
    %63 = arith.addf %60, %62 : vector<1x256xf32>
    %64 = vector.extract_strided_slice %18 {offsets = [3, 0, 0, 0], sizes = [1, 1, 1, 256], strides = [1, 1, 1, 1]} : vector<4x1x1x256xf32> to vector<1x1x1x256xf32>
    %65 = vector.shape_cast %64 : vector<1x1x1x256xf32> to vector<1x256xf32>
    %66 = arith.addf %63, %65 : vector<1x256xf32>
    %67 = arith.addf %55, %66 : vector<1x256xf32>
    %c2_28 = arith.constant 2 : index
    %c0_29 = arith.constant 0 : index
    %c0_30 = arith.constant 0 : index
    %c0_31 = arith.constant 0 : index
    %68 = vector.load %arg5[%c2_28, %c0_29, %c0_30, %c0_31] : memref<3x1x1x256xf32, #tpu.memory_space<vmem>>, vector<1x1x1x256xf32>
    %69 = vector.shape_cast %68 : vector<1x1x1x256xf32> to vector<1x256xf32>
    %70 = vector.shape_cast %67 : vector<1x256xf32> to vector<1x1x1x256xf32>
    tpu.vector_store %arg5[%c2_28, %c0_29, %c0_30, %c0_31], %70 {strides = array<i32>} : memref<3x1x1x256xf32, #tpu.memory_space<vmem>>, vector<1x1x1x256xf32>,
    %c0_i32_32 = arith.constant 0 : i32
    %71 = arith.cmpi eq, %arg1, %c0_i32_32 : i32
    %72 = arith.extui %71 : i1 to i32
    %c0_i32_33 = arith.constant 0 : i32
    %73 = arith.cmpi ne, %72, %c0_i32_33 : i32
    scf.if %73 {
      %c0_34 = arith.constant 0 : index
      %c0_35 = arith.constant 0 : index
      %c0_36 = arith.constant 0 : index
      %c0_37 = arith.constant 0 : index
      %74 = vector.load %arg5[%c0_34, %c0_35, %c0_36, %c0_37] : memref<3x1x1x256xf32, #tpu.memory_space<vmem>>, vector<3x1x1x256xf32>
      %cst_38 = arith.constant dense<0.000000e+00> : vector<3x1xf32>
      %75 = vector.multi_reduction <add>, %74, %cst_38 [2, 3] : vector<3x1x1x256xf32> to vector<3x1xf32>
      %76 = vector.shape_cast %75 : vector<3x1xf32> to vector<1x3x1xf32>
      %c0_39 = arith.constant 0 : index
      %c0_40 = arith.constant 0 : index
      %c0_41 = arith.constant 0 : index
      %77 = vector.load %arg4[%c0_39, %c0_40, %c0_41] : memref<1x3x1xf32, #tpu.memory_space<vmem>>, vector<1x3x1xf32>
      tpu.vector_store %arg4[%c0_39, %c0_40, %c0_41], %76 {strides = array<i32>} : memref<1x3x1xf32, #tpu.memory_space<vmem>>, vector<1x3x1xf32>,
    } else {
    }
    return
  }
  func.func @transform_0(%arg0: i32, %arg1: i32) -> (i32, i32, i32, i32) {
    %c0_i32 = arith.constant 0 : i32
    %c0_i32_0 = arith.constant 0 : i32
    %c0_i32_1 = arith.constant 0 : i32
    return %arg0, %c0_i32, %arg1, %c0_i32_0 : i32, i32, i32, i32
  }
  func.func @transform_1(%arg0: i32, %arg1: i32) -> (i32, i32, i32, i32) {
    %c0_i32 = arith.constant 0 : i32
    %c0_i32_0 = arith.constant 0 : i32
    %c0_i32_1 = arith.constant 0 : i32
    return %arg0, %c0_i32, %arg1, %c0_i32_0 : i32, i32, i32, i32
  }
  func.func @transform_2(%arg0: i32, %arg1: i32) -> (i32, i32, i32) {
    %c0_i32 = arith.constant 0 : i32
    %c0_i32_0 = arith.constant 0 : i32
    %c0_i32_1 = arith.constant 0 : i32
    return %arg0, %c0_i32, %c0_i32_0 : i32, i32, i32
  }
}

</mosaic_0001>

<bundles_post_ra>
// kernel: tpu_custom_call.1
= control target key start
LH: loop header
LB: loop body
LE: loop exit
PB: predicated region body
PF: predicated region fallthrough
CT: control target
= control target key end

     0   :  { %7 = vsyncpa [#allocation4], 0  ;;  %s317_s0 = inlined_call_operand.hbm [shape: f32[4,2,1,256], index: 0, kind: input, shape index: {}]   ;;  %s318_s1 = inlined_call_operand.hbm [shape: s32[4,1,1,256], index: 1, kind: input, shape index: {}]   ;;  %s319_s2 = inlined_call_operand.vmem [shape: f32[1,3,1], index: 2, kind: output, shape index: {}]  }
   0x1   :  { %s13_s11 = sshll.u32 %s317_s0, 4  ;;  %s14_s11 = int_to_ptr.hbm [resolvable:$true] %s13_s11 }
   0x2   :  { %8 = vsyncpa [#allocation6], 0  ;;  %s266_s12 = smov [#allocation3]   ;;  %s26_s16 = sshll.u32 %s318_s1, 4  ;;  %s27_s16 = int_to_ptr.hbm [resolvable:$true] %s26_s16 }
   0x3   :  { %s15_s13 = sshll.u32 %s266_s12, 4  ;;  %s267_s17 = smov 32   ;;  %s16_s13 = int_to_ptr.vmem [resolvable:$true] %s15_s13 }
   0x4   :  { %s268_s18 = smov 2   ;;  %s269_s19 = smov [#allocation5]  }
   0x5   :  { %21 = dma.hbm_to_vmem [thread:$0]  %s14_s11, 256, %s16_s13, [#allocation4], %s267_s17, %s267_s17, %s268_s18  }
   0x6   :  { %s28_s20 = sshll.u32 %s269_s19, 4  ;;  %s29_s20 = int_to_ptr.vmem [resolvable:$true] %s28_s20 }
   0x7   :  { %34 = dma.hbm_to_vmem [thread:$0]  %s27_s16, 128, %s29_s20, [#allocation6], %s267_s17, %s267_s17, %s268_s18  }
   0x8   :  { %262 = dma.done.wait [#allocation4], 256  }
   0x9   :  { %263 = vsyncadd [#allocation4], 4294967040 }
   0xa   :  { %264 = dma.done.wait [#allocation6], 128  }
   0xb   :  { %265 = vsyncadd [#allocation6], 4294967168  ;;  %v47_v0 = vlaneseq  ;;  %v270_v2 = vmov 0.0   ;;  %v54_v3 = vld [vmem:[#allocation3] sm:$0x3]  ;;  %vm147_vm5 = vcmask 1040384  }
   0xc   :  { %v55_v4 = vld [vmem:[#allocation3 + $0x2] sm:$0x3]  ;;  %v56_v5 = vld [vmem:[#allocation3 + $0x4] sm:$0x3]  ;;  %v57_v6 = vld [vmem:[#allocation3 + $0x6] sm:$0x3] }
   0xd   :  { %vm292_vm0 = vcmp.lt.s32.totalorder %v47_v0, 256  ;;  %v58_v7 = vld [vmem:[#allocation3 + $0x8] sm:$0x3]  ;;  %v59_v8 = vld [vmem:[#allocation3 + $0xa] sm:$0x3]  ;;  %v62_v9 = vsub.f32 %v55_v4, %v54_v3  ;;  %v63_v12 = vsub.f32 %v57_v6, %v56_v5  ;;  %vm184_vm6 = vcmask 1041409  }
   0xe   :  { %51 = vst.msk [vmem:[#allocation2] sm:$0x3] %vm292_vm0, %v270_v2  ;;  %v60_v10 = vld [vmem:[#allocation3 + $0xc] sm:$0x3]  ;;  %v61_v11 = vld [vmem:[#allocation3 + $0xe] sm:$0x3]  ;;  %v64_v13 = vsub.f32 %v59_v8, %v58_v7 }
   0xf   :  { %52 = vst.msk [vmem:[#allocation2 + $0x2] sm:$0x3] %vm292_vm0, %v270_v2  ;;  %v82_v14 = vld [vmem:[#allocation5] sm:$0x3]  ;;  %v65_v15 = vsub.f32 %v61_v11, %v60_v10  ;;  %v66_v16 = vmul.f32 0.5, %v62_v9  ;;  %v67_v19 = vmul.f32 0.5, %v63_v12 }
  0x10   :  { %53 = vst.msk [vmem:[#allocation2 + $0x4] sm:$0x3] %vm292_vm0, %v270_v2  ;;  %v83_v17 = vld [vmem:[#allocation5 + $0x2] sm:$0x3]  ;;  %v84_v18 = vld [vmem:[#allocation5 + $0x4] sm:$0x3] }
  0x11   :  { %vm86_vm1 = vcmp.eq.s32.totalorder %v82_v14, 1  ;;  %v68_v20 = vmul.f32 0.5, %v64_v13  ;;  %v85_v21 = vld [vmem:[#allocation5 + $0x6] sm:$0x3]  ;;  %vm87_vm2 = vcmp.eq.s32.totalorder %v83_v17, 1  ;;  %v69_v22 = vmul.f32 0.5, %v65_v15 }
  0x12   :  { %206 = vtanh.f32 %v66_v16  ;;  %vm88_vm3 = vcmp.eq.s32.totalorder %v84_v18, 1  ;;  %v197_v23 = vsel %vm86_vm1, 1.0, %v270_v2  ;;  %v198_v24 = vsel %vm87_vm2, 1.0, %v270_v2 }
  0x13   :  { %208 = vtanh.f32 %v67_v19  ;;  %vm89_vm4 = vcmp.eq.s32.totalorder %v85_v21, 1  ;;  %v121_v25 = vadd.f32 %v198_v24, %v197_v23  ;;  %v199_v26 = vsel %vm88_vm3, 1.0, %v270_v2 }
  0x14   :  { %210 = vtanh.f32 %v68_v20  ;;  %v200_v28 = vsel %vm89_vm4, 1.0, %v270_v2  ;;  %vm186_vm7 = vcmask 1042434   ;;  %vm189_vm8 = vcmask 2048  }
  0x15   :  { %212 = vtanh.f32 %v69_v22  ;;  %v122_v27 = vadd.f32 %v199_v26, %v121_v25  ;;  %v98_v54 = vld [vmem:[#allocation2] sm:$0x3] }
  0x16   :  { %v113_v51 = vld [vmem:[#allocation2 + $0x2] sm:$0x3] }
  0x17   :  { %v120_v29 = vld [vmem:[#allocation2 + $0x4] sm:$0x3]  ;;  %v123_v31 = vadd.f32 %v200_v28, %v122_v27 }
  0x18   :  { %v207_v30 = vpop.eup %206 }
  0x19   :  { %v209_v32 = vpop.eup %208  ;;  %v74_v33 = vmul.f32 0.5, %v207_v30  ;;  %v124_v36 = vadd.f32 %v123_v31, %v120_v29 }
  0x1a   :  { %v211_v34 = vpop.eup %210  ;;  %v75_v35 = vmul.f32 0.5, %v209_v32 }
  0x1b   :  { %v213_v37 = vpop.eup %212  ;;  %v76_v38 = vmul.f32 0.5, %v211_v34  ;;  %v78_v39 = vadd.f32 0.5, %v74_v33  ;;  %125 = vst.msk [vmem:[#allocation2 + $0x4] sm:$0x3] %vm292_vm0, %v124_v36 }
  0x1c   :  { %v77_v40 = vmul.f32 0.5, %v213_v37  ;;  %v79_v41 = vadd.f32 0.5, %v75_v35 }
  0x1d   :  { %v80_v42 = vadd.f32 0.5, %v76_v38  ;;  %v99_v43 = vmul.f32 %v197_v23, %v78_v39 }
  0x1e   :  { %v81_v44 = vadd.f32 0.5, %v77_v40  ;;  %v100_v45 = vmul.f32 %v198_v24, %v79_v41  ;;  %v114_v46 = vadd.f32 %v79_v41, %v78_v39 }
  0x1f   :  { %v101_v47 = vmul.f32 %v199_v26, %v80_v42 }
  0x20   :  { %v102_v48 = vmul.f32 %v200_v28, %v81_v44  ;;  %v103_v49 = vadd.f32 %v100_v45, %v99_v43  ;;  %v115_v50 = vadd.f32 %v114_v46, %v80_v42 }
  0x22   :  { %v104_v52 = vadd.f32 %v103_v49, %v101_v47  ;;  %v116_v53 = vadd.f32 %v115_v50, %v81_v44  ;;  %v131_v55 = vld [vmem:[#allocation2 + $0x4] sm:$0x3] }
  0x23   :  { %v139_v57 = vperm.slane %v131_v55, 0  ;;  %v140_v58 = vperm.slane %v131_v55, 1 }
  0x24   :  { %v105_v56 = vadd.f32 %v104_v52, %v102_v48  ;;  %v117_v59 = vadd.f32 %v116_v53, %v113_v51 }
  0x25   :  { %v170_v61 = vsel %vm147_vm5, %v139_v57, 0.0  ;;  %v171_v62 = vsel %vm147_vm5, %v140_v58, 0.0 }
  0x26   :  { %v106_v60 = vadd.f32 %v105_v56, %v98_v54  ;;  %118 = vst.msk [vmem:[#allocation2 + $0x2] sm:$0x3] %vm292_vm0, %v117_v59  ;;  %v172_v63 = vadd.f32 %v171_v62, %v170_v61 }
  0x28   :  { %111 = vst.msk [vmem:[#allocation2] sm:$0x3] %vm292_vm0, %v106_v60  ;;  %173 = vadd.xlane.f32.xlu1 %v172_v63 }
  0x2d   :  { %v130_v2 = vld [vmem:[#allocation2 + $0x2] sm:$0x3] }
  0x2e   :  { %v137_v7 = vperm.slane %v130_v2, 0  ;;  %v138_v8 = vperm.slane %v130_v2, 1 }
  0x2f   :  { %v129_v0 = vld [vmem:[#allocation2] sm:$0x3] }
  0x30   :  { %v135_v3 = vperm.slane %v129_v0, 0  ;;  %v136_v4 = vperm.slane %v129_v0, 1  ;;  %v159_v10 = vsel %vm147_vm5, %v137_v7, 0.0  ;;  %v160_v11 = vsel %vm147_vm5, %v138_v8, 0.0 }
  0x31   :  { %v161_v12 = vadd.f32 %v160_v11, %v159_v10 }
  0x32   :  { %v148_v5 = vsel %vm147_vm5, %v135_v3, 0.0  ;;  %v149_v6 = vsel %vm147_vm5, %v136_v4, 0.0 }
  0x33   :  { %v150_v9 = vadd.f32 %v149_v6, %v148_v5 }
  0x35   :  { %151 = vadd.xlane.f32.xlu0 %v150_v9 }
  0x3d   :  { %162 = vadd.xlane.f32.xlu0 %v161_v12 }
  0x9b   :  { %v174_v1 = vpop.xlane.xlu1 %173 }
  0x9c   :  { %v175_v14 = vrot.slane %v174_v1, 4 }
  0x9e   :  { %v176_v17 = vadd.f32 %v175_v14, %v174_v1 }
  0xa0   :  { %v177_v19 = vrot.slane %v176_v17, 2 }
  0xa2   :  { %v178_v24 = vadd.f32 %v177_v19, %v176_v17 }
  0xa4   :  { %v179_v28 = vrot.slane %v178_v24, 1 }
  0xa6   :  { %v180_v32 = vadd.f32 %v179_v28, %v178_v24 }
  0xa8   :  { %v152_v13 = vpop.xlane.xlu0 %151 }
  0xa9   :  { %v153_v15 = vrot.slane %v152_v13, 4 }
  0xab   :  { %v154_v16 = vadd.f32 %v153_v15, %v152_v13 }
  0xad   :  { %v155_v18 = vrot.slane %v154_v16, 2 }
  0xaf   :  { %v156_v22 = vadd.f32 %v155_v18, %v154_v16 }
  0xb0   :  { %v163_v20 = vpop.xlane.xlu0 %162 }
  0xb1   :  { %v164_v21 = vrot.slane %v163_v20, 4  ;;  %v157_v26 = vrot.slane %v156_v22, 1 }
  0xb3   :  { %v165_v23 = vadd.f32 %v164_v21, %v163_v20  ;;  %v158_v30 = vadd.f32 %v157_v26, %v156_v22 }
  0xb5   :  { %v166_v25 = vrot.slane %v165_v23, 2 }
  0xb7   :  { %v167_v27 = vadd.f32 %v166_v25, %v165_v23 }
  0xb9   :  { %v168_v29 = vrot.slane %v167_v27, 1 }
  0xbb   :  { %v169_v31 = vadd.f32 %v168_v29, %v167_v27 }
  0xbd   :  { %v185_v33 = vsel %vm184_vm6, %v169_v31, %v158_v30 }
  0xbe   :  { %v187_v34 = vsel %vm186_vm7, %v180_v32, %v185_v33 }
  0xbf   :  { %190 = vst.msk [vmem:[%s319_s2] sm:$0x7] %vm189_vm8, %v187_v34 }
  0xc0   :  { %195 = vsyncpa [#allocation4], 1 }
  0xc1   :  { %196 = vsyncpa [#allocation6], 1 }

</bundles_post_ra>
